<compile_context>
chip_gen: v7x
topology: tpu7x:2x2x1
jax: 0.10.0
libtpu: 0.0.40
codegen_flags: <defaults>
</compile_context>

<pallas_src>
import functools

import jax
import jax.numpy as jnp
from jax import lax
from jax.experimental import pallas as pl
from jax.experimental.pallas import tpu as pltpu


def _cosine_kernel(x_ref, w_ref, wn_ref, o_ref):
    x = x_ref[...]            # [TB, D]  (f32 or bf16 operand dtype)
    w = w_ref[...]            # [TO, D]

    # Pairwise dot products on the MXU; contract the shared last/lane axis
    # directly (trans_b handled natively, no transposed tile materialized).
    dots = lax.dot_general(
        x, w,
        dimension_numbers=(((1,), (1,)), ((), ())),
        preferred_element_type=jnp.float32,
    )                                                     # [TB, TO] f32

    # Row norms of x in f32 (VPU + XLU reduction). Weight norms were hoisted
    # to the wrapper and arrive as a lane-aligned [1, TO] row.
    xf = x.astype(jnp.float32)
    x_norm = jnp.sqrt(jnp.sum(xf * xf, axis=-1, keepdims=True))   # [TB, 1]

    # Keep exact PyTorch eps semantics: clamp the norm *product* at 1e-8.
    denom = jnp.maximum(x_norm * wn_ref[...], 1e-8)               # [TB, TO]
    inv = pl.reciprocal(denom, approx=False)   # EUP path, full precision
    o_ref[...] = (dots * inv).astype(o_ref.dtype)


def _pick_tile(dim, candidates):
    """Largest candidate that evenly divides `dim`, else the full dim
    (a full-extent block is always a legal BlockSpec extent)."""
    for c in candidates:
        if dim >= c and dim % c == 0:
            return c
    return dim


def cosine_layer_old(x, weight, bias=None, *, use_bf16_matmul=False):
    """Pallas implementation of CosineLayer_Old.forward.

    x:      [B, size_in]  float32
    weight: [size_out, size_in] float32
    bias:   optional [size_in] float32 (added to x before cosine sim)
    use_bf16_matmul: cast MXU operands to bf16 (f32 accumulation); halves HBM
                     traffic on v6e/v7x at a small accuracy cost.
    returns [B, size_out] float32
    """
    if bias is not None:
        x = x + bias[None, :]

    B, D = x.shape
    O, D2 = weight.shape
    assert D == D2

    # Hoisted: weight norms are independent of x. Computed once in f32 and
    # passed lane-aligned as [1, O] so the kernel epilogue is a pure
    # broadcast-multiply (no per-tile recompute, no [O,1]->[1,O] relayout).
    w_norm = jnp.sqrt(jnp.sum(weight.astype(jnp.float32) ** 2, axis=-1))[None, :]

    op_dtype = jnp.bfloat16 if use_bf16_matmul else jnp.float32
    x_op = x.astype(op_dtype)
    w_op = weight.astype(op_dtype)

    # Tile B and O. Output O-tile is kept a multiple of 128 when possible for
    # lane-dense unmasked stores; otherwise fall back to the full extent.
    tb = _pick_tile(B, (256, 128, 64, 32, 16, 8))
    to = _pick_tile(O, (512, 256, 128))
    grid = (B // tb, O // to)
    # TODO(synk): add a K grid axis with a VMEM f32 accumulator (pl.when init)
    # if size_in ever grows too large to keep the full D extent resident.

    # VMEM budget: double-buffered x/w tiles + output tile + norm row, with
    # headroom. Floor 16 MiB (v5e default scoped), cap 64 MiB (v7x physical).
    elt = jnp.dtype(op_dtype).itemsize
    est = (2 * tb * D * elt + 2 * to * D * elt + 2 * tb * to * 4 + 2 * to * 4)
    vmem_limit = int(min(max(4 * est, 16 * 1024 * 1024), 64 * 1024 * 1024))

    out = pl.pallas_call(
        _cosine_kernel,
        out_shape=jax.ShapeDtypeStruct((B, O), jnp.float32),
        grid_spec=pltpu.PrefetchScalarGridSpec(
            num_scalar_prefetch=0,
            grid=grid,
            in_specs=[
                pl.BlockSpec((tb, D), lambda i, j: (i, 0)),
                pl.BlockSpec((to, D), lambda i, j: (j, 0)),
                pl.BlockSpec((1, to), lambda i, j: (0, j)),
            ],
            out_specs=pl.BlockSpec((tb, to), lambda i, j: (i, j)),
        ),
        compiler_params=pltpu.CompilerParams(
            # Both grid axes are independent -> megacore sharding on v7x.
            dimension_semantics=("parallel", "parallel"),
            vmem_limit_bytes=vmem_limit,
        ),
    )(x_op, w_op, w_norm)
    return out


def _reference(x, weight, bias=None):
    if bias is not None:
        x = x + bias[None, :]
    dots = x @ weight.T
    xn = jnp.linalg.norm(x, axis=-1, keepdims=True)
    wn = jnp.linalg.norm(weight, axis=-1, keepdims=True)
    return dots / jnp.maximum(xn * wn.T, 1e-8)


if __name__ == "__main__":
    # Small shapes consistent with the module: size_in=32, size_out=16, batch=8.
    B, size_in, size_out = 8, 32, 16

    key = jax.random.PRNGKey(0)
    kx, kw = jax.random.split(key)

    x = jax.random.normal(kx, (B, size_in), dtype=jnp.float32)

    # Deterministic kaiming_normal_ init: std = sqrt(2 / fan_in), fan_in = size_in.
    std = (2.0 / size_in) ** 0.5
    weight = jax.random.normal(kw, (size_out, size_in), dtype=jnp.float32) * std

    out = cosine_layer_old(x, weight)
    out = jax.block_until_ready(out)

    ref = _reference(x, weight)
    assert out.shape == (B, size_out)
    assert jnp.allclose(out, ref, atol=1e-5, rtol=1e-5)

    print("KERNEL_OK")
</pallas_src>

<mosaic_0001>
module attributes {stable_mosaic.version = 11 : i64} {
  func.func @_cosine_kernel(%arg0: i32, %arg1: i32, %arg2: memref<8x32xf32, #tpu.memory_space<vmem>>, %arg3: memref<16x32xf32, #tpu.memory_space<vmem>>, %arg4: memref<1x16xf32, #tpu.memory_space<vmem>>, %arg5: memref<8x16xf32, #tpu.memory_space<vmem>>) attributes {dimension_semantics = [#tpu.dimension_semantics<parallel>, #tpu.dimension_semantics<parallel>], iteration_bounds = array<i64: 1, 1>, scalar_prefetch = 0 : i64, scratch_operands = 0 : i64, tpu.core_type = #tpu.core_type<tc>, window_params = [{transform_indices = @transform_0, window_bounds = array<i64: 8, 32>}, {transform_indices = @transform_1, window_bounds = array<i64: 16, 32>}, {transform_indices = @transform_2, window_bounds = array<i64: 1, 16>}, {transform_indices = @transform_3, window_bounds = array<i64: 8, 16>}]} {
    %c0 = arith.constant 0 : index
    %c0_0 = arith.constant 0 : index
    %0 = vector.load %arg2[%c0, %c0_0] : memref<8x32xf32, #tpu.memory_space<vmem>>, vector<8x32xf32>
    %c0_1 = arith.constant 0 : index
    %c0_2 = arith.constant 0 : index
    %1 = vector.load %arg3[%c0_1, %c0_2] : memref<16x32xf32, #tpu.memory_space<vmem>>, vector<16x32xf32>
    %cst = arith.constant dense<0.000000e+00> : vector<8x16xf32>
    %2 = tpu.matmul %0, %1, %cst {dimension_numbers = #tpu.dot_dimension_numbers<[1], [1], [0], [0], [0, 0, 1, 0], [], []>} : vector<8x32xf32>, vector<16x32xf32>, vector<8x16xf32> -> vector<8x16xf32>
    %3 = arith.mulf %0, %0 : vector<8x32xf32>
    %cst_3 = arith.constant dense<0.000000e+00> : vector<8xf32>
    %4 = vector.multi_reduction <add>, %3, %cst_3 [1] : vector<8x32xf32> to vector<8xf32>
    %5 = vector.shape_cast %4 : vector<8xf32> to vector<8x1xf32>
    %6 = math.sqrt %5 : vector<8x1xf32>
    %c0_4 = arith.constant 0 : index
    %c0_5 = arith.constant 0 : index
    %7 = vector.load %arg4[%c0_4, %c0_5] : memref<1x16xf32, #tpu.memory_space<vmem>>, vector<1x16xf32>
    %8 = vector.broadcast %6 : vector<8x1xf32> to vector<8x16xf32>
    %9 = vector.broadcast %7 : vector<1x16xf32> to vector<8x16xf32>
    %10 = arith.mulf %8, %9 : vector<8x16xf32>
    %cst_6 = arith.constant 9.99999993E-9 : f32
    %11 = vector.broadcast %cst_6 : f32 to vector<8x16xf32>
    %12 = arith.maximumf %10, %11 : vector<8x16xf32>
    %13 = tpu.reciprocal %12 : vector<8x16xf32> -> vector<8x16xf32>
    %14 = arith.mulf %2, %13 : vector<8x16xf32>
    %c0_7 = arith.constant 0 : index
    %c0_8 = arith.constant 0 : index
    %15 = vector.load %arg5[%c0_7, %c0_8] : memref<8x16xf32, #tpu.memory_space<vmem>>, vector<8x16xf32>
    tpu.vector_store %arg5[%c0_7, %c0_8], %14 {strides = array<i32>} : memref<8x16xf32, #tpu.memory_space<vmem>>, vector<8x16xf32>,
    return
  }
  func.func @transform_0(%arg0: i32, %arg1: i32) -> (i32, i32) {
    %c0_i32 = arith.constant 0 : i32
    %c0_i32_0 = arith.constant 0 : i32
    return %arg0, %c0_i32 : i32, i32
  }
  func.func @transform_1(%arg0: i32, %arg1: i32) -> (i32, i32) {
    %c0_i32 = arith.constant 0 : i32
    %c0_i32_0 = arith.constant 0 : i32
    return %arg1, %c0_i32 : i32, i32
  }
  func.func @transform_2(%arg0: i32, %arg1: i32) -> (i32, i32) {
    %c0_i32 = arith.constant 0 : i32
    %c0_i32_0 = arith.constant 0 : i32
    return %c0_i32, %arg1 : i32, i32
  }
  func.func @transform_3(%arg0: i32, %arg1: i32) -> (i32, i32) {
    %c0_i32 = arith.constant 0 : i32
    return %arg0, %arg1 : i32, i32
  }
}

</mosaic_0001>

<bundles_post_ra>
// kernel: tpu_custom_call.1
= control target key start
LH: loop header
LB: loop body
LE: loop exit
PB: predicated region body
PF: predicated region fallthrough
CT: control target
= control target key end

     0   :  { %8 = vsyncpa [#allocation3], 0  ;;  %s340_s0 = inlined_call_operand.hbm [shape: f32[8,32], index: 0, kind: input, shape index: {}]   ;;  %s341_s1 = inlined_call_operand.hbm [shape: f32[16,32], index: 1, kind: input, shape index: {}]   ;;  %s342_s2 = inlined_call_operand.vmem [shape: f32[1,16], index: 2, kind: input, shape index: {}]   ;;  %s343_s3 = inlined_call_operand.hbm [shape: f32[8,16], index: 3, kind: output, shape index: {}]  }
   0x1   :  { %9 = vsyncpa [#allocation6], 0 }
   0x2   :  { %10 = vsyncpa [#allocation4], 0  ;;  %s266_s12 = smov [#allocation2]   ;;  %s267_s14 = smov [#allocation5]  }
   0x3   :  { %s17_s13 = sshll.u32 %s266_s12, 4  ;;  %s26_s15 = sshll.u32 %s267_s14, 4  ;;  %s18_s13 = int_to_ptr.vmem [resolvable:$true] %s17_s13  ;;  %s294_s15 = int_to_ptr.vmem [resolvable:$true] %s26_s15 }
   0x4   :  { %s194_s18 = scalar_lea.hbm %s340_s0, 128 }
   0x5   :  { %p195_p0 = scmp.ne.s32.totalorder %s340_s0, %s194_s18  ;;  %p198_p1 = scmp.lt.u32.totalorder %s194_s18, %s340_s0 }
   0x7   :  { %p200_p2 = pnand %p198_p1, %p195_p0 }
   0x9   :  { %203 = shalt.err (!%p200_p2)
}
   0xa   :  { %s204_s23 = scalar_lea.vmem %s18_s13, 128  ;;  %p209_p4 = scmp.lt.s32.totalorder %s18_s13, %s18_s13 }
   0xb   :  { %p205_p3 = scmp.ne.s32.totalorder %s18_s13, %s204_s23  ;;  %p210_p5 = scmp.lt.s32.totalorder %s204_s23, %s204_s23 }
   0xd   :  { %p211_p6 = por %p210_p5, %p209_p4 }
   0xf   :  { %p212_p7 = pnand %p211_p6, %p205_p3 }
  0x11   :  { %215 = shalt.err (!%p212_p7)
}
  0x12   :  { %20 = dma.hbm_to_vmem [thread:$0]  %s340_s0, 128, %s18_s13, [#allocation3]  }
  0x13   :  { %s216_s28 = scalar_lea.hbm %s341_s1, 256 }
  0x14   :  { %p217_p8 = scmp.ne.s32.totalorder %s341_s1, %s216_s28  ;;  %p220_p9 = scmp.lt.u32.totalorder %s216_s28, %s341_s1 }
  0x16   :  { %p222_p10 = pnand %p220_p9, %p217_p8 }
  0x18   :  { %225 = shalt.err (!%p222_p10)
}
  0x19   :  { %s226_s6 = scalar_lea.vmem %s294_s15, 256  ;;  %p231_p12 = scmp.lt.s32.totalorder %s294_s15, %s294_s15 }
  0x1a   :  { %p227_p11 = scmp.ne.s32.totalorder %s294_s15, %s226_s6  ;;  %p232_p13 = scmp.lt.s32.totalorder %s226_s6, %s226_s6 }
  0x1c   :  { %p233_p0 = por %p232_p13, %p231_p12 }
  0x1e   :  { %p234_p1 = pnand %p233_p0, %p227_p11 }
  0x20   :  { %237 = shalt.err (!%p234_p1)
}
  0x21   :  { %s268_s0 = smov 128   ;;  %s269_s7 = smov 8  }
  0x22   :  { %32 = dma.hbm_to_vmem [thread:$0]  %s341_s1, 256, %s294_s15, [#allocation6], %s268_s0, %s268_s0, %s269_s7  }
  0x23   :  { %260 = dma.done.wait [#allocation3], 128  }
  0x24   :  { %261 = vsyncadd [#allocation3], 4294967168 }
  0x25   :  { %262 = dma.done.wait [#allocation6], 256  }
  0x26   :  { %263 = vsyncadd [#allocation6], 4294967040  ;;  %v270_v0 = vmov 0.0|0.0   ;;  %vm271_vm0 = vmmov 0   ;;  %v272_v1 = vmov 0.0   ;;  %vm44_vm1 = vcmask 261120  }
  0x27   :  { %178 = vmatprep.subr.bf16.mxu0 %v270_v0  ;;  %175 = vmatprep.mubr.msk.f32.mxu0 %vm271_vm0, %v272_v1  ;;  %vm180_vm2 = vmpackc.low %vm44_vm1, %vm44_vm1  ;;  %v42_v2 = vld [vmem:[#allocation5] sm:$0xff]  ;;  %v43_v3 = vld [vmem:[#allocation5 + $0x8] sm:$0xff]  ;;  %s273_s11 = smov [#allocation7]   ;;  %vm146_vm5 = vcmask 130048  }
  0x28   :  { %v41_v4 = vld [vmem:[#allocation2] sm:$0xff]  ;;  %v179_v5 = vpack.c.bf16 %v43_v3, %v42_v2  ;;  %s154_s12 = sshll.u32 %s273_s11, 4  ;;  %s155_s12 = int_to_ptr.vmem [resolvable:$true] %s154_s12 }
  0x29   :  { %v124_v6 = vmul.f32 %v41_v4, %v41_v4  ;;  %v167_v14 = vld [vmem:[%s342_s2] ss:$0 sm:$0xff]  ;;  %s238_s13 = scalar_lea.vmem %s155_s12, 128  ;;  %p243_p3 = scmp.lt.s32.totalorder %s155_s12, %s155_s12 }
  0x2a   :  { %181 = vmatpush3.bf16.xpose.msk.msra.mxu0 %vm180_vm2, %v179_v5  ;;  %p239_p2 = scmp.ne.s32.totalorder %s155_s12, %s238_s13  ;;  %p244_p4 = scmp.lt.s32.totalorder %s238_s13, %s238_s13 }
  0x2b   :  { %v125_v7 = vsel %vm44_vm1, %v124_v6, 0.0 }
  0x2c   :  { %126 = vadd.xlane.f32.xlu0 %v125_v7  ;;  %p245_p5 = por %p244_p4, %p243_p3 }
  0x2e   :  { %p246_p6 = pnand %p245_p5, %p239_p2 }
  0x31   :  { %176 = vmatmul.mubr.msk.f32.vlgmr.msra.gmra.mrb[0].mxu0 %vm44_vm1, %v41_v4 }
  0xb9   :  { %v127_v8 = vpop.xlane.xlu0 %126 }
  0xba   :  { %190 = vrsqrt.f32 %v127_v8  ;;  %vm130_vm3 = vcmp.eq.f32.partialorder %v127_v8, inf  ;;  %v133_v11 = vand.u32 2147483648, %v127_v8  ;;  %vm132_vm4 = vcmp.eq.f32.partialorder %v127_v8, 0.0 }
  0xc4   :  { %v191_v9 = vpop.eup %190 }
  0xc5   :  { %v129_v10 = vmul.f32 %v191_v9, %v127_v8 }
  0xc7   :  { %v131_v12 = vsel %vm130_vm3, %v127_v8, %v129_v10 }
  0xc8   :  { %v134_v13 = vsel %vm132_vm4, %v133_v11, %v131_v12 }
  0xc9   :  { %v142_v15 = vmul.f32 %v167_v14, %v134_v13 }
  0xcb   :  { %v143_v16 = vmax.f32 %v142_v15, 1e-08 }
  0xcd   :  { %192 = vrcp.f32 %v143_v16 }
  0xd7   :  { %v193_v17 = vpop.eup %192 }
 0x104   :  { %v120_v18 = vpop.f32.mrb[0].mxu0 }
 0x105   :  { %v145_v19 = vmul.f32 %v193_v17, %v120_v18  ;;  %v177_v20 = vpop.f32.mrb[1].mxu0 }
 0x107   :  { %147 = vst.msk [vmem:[#allocation7] sm:$0xff] %vm146_vm5, %v145_v19 }
 0x108   :  { %249 = shalt.err (!%p246_p6)
}
 0x109   :  { %s250_s15 = scalar_lea.hbm %s343_s3, 128 }
 0x10a   :  { %p251_p7 = scmp.ne.s32.totalorder %s343_s3, %s250_s15  ;;  %p254_p8 = scmp.lt.u32.totalorder %s250_s15, %s343_s3 }
 0x10c   :  { %p256_p9 = pnand %p254_p8, %p251_p7 }
 0x10e   :  { %259 = shalt.err (!%p256_p9)
}
 0x10f   :  { %157 = dma.vmem_to_hbm [thread:$0]  %s155_s12, 128, %s343_s3, [#allocation4]  }
 0x110   :  { %264 = dma.done.wait [#allocation4], 128  }
 0x111   :  { %265 = vsyncadd [#allocation4], 4294967168 }
 0x112   :  { %161 = vsyncpa [#allocation3], 1 }
 0x113   :  { %162 = vsyncpa [#allocation6], 1 }
 0x114   :  { %163 = vsyncpa [#allocation4], 1 }

</bundles_post_ra>
